<compile_context>
chip_gen: v5e
topology: v5e:2x2
jax: 0.10.0
libtpu: 0.0.40
codegen_flags: <defaults>
</compile_context>

<pallas_src>
import functools

import jax
import jax.numpy as jnp
from jax import lax
from jax.experimental import pallas as pl
from jax.experimental.pallas import tpu as pltpu


def _dot_nt(x, y):
    """x @ y.T on the MXU (contract last dims), f32 accumulation, no transpose op."""
    return lax.dot_general(
        x, y, (((1,), (1,)), ((), ())), preferred_element_type=jnp.float32
    )


def _nce_kernel(a_ref, b_ref, part_ref, *, inv_t, row_block):
    i = pl.program_id(0)
    batch = a_ref.shape[0]
    inv_t = jnp.float32(inv_t)

    # Row blocks sliced from the VMEM-resident full arrays (no extra HBM DMA).
    start = i * row_block
    if row_block % 8 == 0:
        start = pl.multiple_of(start, 8)
    a_blk = a_ref[pl.ds(start, row_block), :]     # (TR, H)
    b_blk = b_ref[pl.ds(start, row_block), :]     # (TR, H)
    a_full = a_ref[...]                           # (B, H), resident
    b_full = b_ref[...]                           # (B, H), resident

    # --- four (TR, B) similarity blocks on the MXU -------------------------
    sim12 = _dot_nt(a_blk, b_full) * inv_t   # rows of A vs B
    sim11 = _dot_nt(a_blk, a_full) * inv_t   # rows of A vs A
    sim21 = _dot_nt(b_blk, a_full) * inv_t   # rows of B vs A  (== sim12.T rows)
    sim22 = _dot_nt(b_blk, b_full) * inv_t   # rows of B vs B

    # Mask the global diagonal of sim11 / sim22 (self-similarity excluded).
    cols = lax.broadcasted_iota(jnp.int32, (row_block, batch), 1)
    rows = lax.broadcasted_iota(jnp.int32, (row_block, batch), 0) + i * row_block
    diag = cols == rows
    # Forward-only kernel: -inf is safe (exp(-inf)=0); the logsumexp max is
    # always finite because the sim12/sim21 half of each row is unmasked.
    neg_inf = jnp.float32(-jnp.inf)
    sim11 = jnp.where(diag, neg_inf, sim11)
    sim22 = jnp.where(diag, neg_inf, sim22)

    # picked[r] = logits[g, g] = <a_g, b_g> / T  (identical for top & bottom rows)
    picked = jnp.sum(a_blk.astype(jnp.float32) * b_blk.astype(jnp.float32),
                     axis=-1, keepdims=True) * inv_t            # (TR, 1)

    # Row-wise logsumexp over the two column halves without concatenation.
    def _lse(left, right):
        m = jnp.maximum(jnp.max(left, axis=-1, keepdims=True),
                        jnp.max(right, axis=-1, keepdims=True))
        s = (jnp.sum(jnp.exp(left - m), axis=-1, keepdims=True)
             + jnp.sum(jnp.exp(right - m), axis=-1, keepdims=True))
        return jnp.log(s) + m

    lse_top = _lse(sim12, sim11)   # top-half rows of this block
    lse_bot = _lse(sim22, sim21)   # bottom-half rows of this block

    partial = jnp.sum(lse_top - picked) + jnp.sum(lse_bot - picked)
    # Lane-dense (1, 8, 128) output block holding the partial sum.
    part_ref[...] = jnp.full(part_ref.shape, partial, dtype=jnp.float32)


def _pick_row_block(batch):
    """Largest multiple-of-8 divisor of `batch` subject to a VMEM-friendly cap."""
    if batch % 8 != 0:
        return batch
    # Keep each (row_block, batch) f32 temporary around <= ~1 MiB.
    cap = max(8, min(256, (1 << 20) // max(batch * 4, 1)))
    cap -= cap % 8
    cap = max(cap, 8)
    if batch >= 16:
        # Prefer >= 2 grid steps so the "parallel" axis can use both v7x cores.
        cap = min(cap, batch // 2)
        cap = max(cap - cap % 8, 8)
    best = 8
    cand = 8
    while cand <= min(batch, cap):
        if batch % cand == 0:
            best = cand
        cand += 8
    return best


def nce_loss_pallas(batch_sample_one, batch_sample_two, temperature, *,
                    row_block=None):
    a, b = batch_sample_one, batch_sample_two
    B, H = a.shape
    if row_block is None:
        row_block = _pick_row_block(B)
    if B % row_block != 0 or (row_block % 8 != 0 and row_block != B):
        row_block = B
    num_blocks = B // row_block

    kernel = functools.partial(
        _nce_kernel, inv_t=float(1.0 / temperature), row_block=row_block
    )

    itemsize = jnp.dtype(a.dtype).itemsize
    est = (2 * 2 * B * H * itemsize        # resident A, B (worst-case buffering)
           + 10 * row_block * B * 4        # sims + softmax temporaries
           + 2 * 8 * 128 * 4)              # output block
    vmem_limit = int(min(max(2 * est, 32 * 1024 * 1024), 48 * 1024 * 1024))

    grid_spec = pltpu.PrefetchScalarGridSpec(
        num_scalar_prefetch=0,
        grid=(num_blocks,),
        in_specs=[
            pl.BlockSpec((B, H), lambda i: (0, 0)),   # full A (resident)
            pl.BlockSpec((B, H), lambda i: (0, 0)),   # full B (resident)
        ],
        out_specs=pl.BlockSpec((1, 8, 128), lambda i: (i, 0, 0)),
    )

    partials = pl.pallas_call(
        kernel,
        out_shape=jax.ShapeDtypeStruct((num_blocks, 8, 128), jnp.float32),
        grid_spec=grid_spec,
        compiler_params=pltpu.CompilerParams(
            dimension_semantics=("parallel",),
            vmem_limit_bytes=vmem_limit,
        ),
    )(a, b)

    return jnp.sum(partials[:, 0, 0]) / jnp.float32(2 * B)


def nce_loss_ref(a, b, temperature):
    """Pure-JAX reference mirroring the PyTorch module (intent_ids=None)."""
    a = a.astype(jnp.float32)
    b = b.astype(jnp.float32)
    sim11 = (a @ a.T) / temperature
    sim22 = (b @ b.T) / temperature
    sim12 = (a @ b.T) / temperature
    d = sim12.shape[-1]
    eye = jnp.eye(d, dtype=bool)
    sim11 = jnp.where(eye, -jnp.inf, sim11)
    sim22 = jnp.where(eye, -jnp.inf, sim22)
    raw1 = jnp.concatenate([sim12, sim11], axis=-1)
    raw2 = jnp.concatenate([sim22, sim12.T], axis=-1)
    logits = jnp.concatenate([raw1, raw2], axis=-2)
    labels = jnp.arange(2 * d)
    lse = jax.scipy.special.logsumexp(logits, axis=-1)
    picked = logits[jnp.arange(2 * d), labels]
    return jnp.mean(lse - picked)


if __name__ == "__main__":
    temperature = 0.5
    key = jax.random.PRNGKey(0)

    # Case 1: multi-block grid (B=16 -> row_block=8, 2 grid steps).
    k1, k2, k3, k4 = jax.random.split(key, 4)
    a1 = jax.random.normal(k1, (16, 32), dtype=jnp.float32)
    b1 = jax.random.normal(k2, (16, 32), dtype=jnp.float32)
    loss1 = jax.block_until_ready(nce_loss_pallas(a1, b1, temperature))
    ref1 = nce_loss_ref(a1, b1, temperature)
    assert jnp.allclose(loss1, ref1, rtol=1e-5, atol=1e-5), (loss1, ref1)

    # Case 2: single-block fallback (B=8).
    a2 = jax.random.normal(k3, (8, 32), dtype=jnp.float32)
    b2 = jax.random.normal(k4, (8, 32), dtype=jnp.float32)
    loss2 = jax.block_until_ready(nce_loss_pallas(a2, b2, temperature))
    ref2 = nce_loss_ref(a2, b2, temperature)
    assert jnp.allclose(loss2, ref2, rtol=1e-5, atol=1e-5), (loss2, ref2)

    print("KERNEL_OK")
</pallas_src>

<mosaic_0001>
module attributes {stable_mosaic.version = 11 : i64} {
  func.func @_nce_kernel(%arg0: i32, %arg1: memref<16x32xf32, #tpu.memory_space<vmem>>, %arg2: memref<16x32xf32, #tpu.memory_space<vmem>>, %arg3: memref<1x8x128xf32, #tpu.memory_space<vmem>>) attributes {dimension_semantics = [#tpu.dimension_semantics<parallel>], iteration_bounds = array<i64: 2>, scalar_prefetch = 0 : i64, scratch_operands = 0 : i64, tpu.core_type = #tpu.core_type<tc>, window_params = [{pipeline_mode = #tpu.pipeline_mode<synchronous>, transform_indices = @transform_0, window_bounds = array<i64: 16, 32>}, {pipeline_mode = #tpu.pipeline_mode<synchronous>, transform_indices = @transform_1, window_bounds = array<i64: 16, 32>}, {transform_indices = @transform_2, window_bounds = array<i64: 1, 8, 128>}]} {
    %c8_i32 = arith.constant 8 : i32
    %0 = arith.muli %arg0, %c8_i32 : i32
    %1 = tpu.assume_multiple %0, 8 : i32
    %2 = arith.index_cast %1 : i32 to index
    %c0 = arith.constant 0 : index
    %3 = vector.load %arg1[%2, %c0] : memref<16x32xf32, #tpu.memory_space<vmem>>, vector<8x32xf32>
    %4 = arith.index_cast %1 : i32 to index
    %c0_0 = arith.constant 0 : index
    %5 = vector.load %arg2[%4, %c0_0] : memref<16x32xf32, #tpu.memory_space<vmem>>, vector<8x32xf32>
    %c0_1 = arith.constant 0 : index
    %c0_2 = arith.constant 0 : index
    %6 = vector.load %arg1[%c0_1, %c0_2] : memref<16x32xf32, #tpu.memory_space<vmem>>, vector<16x32xf32>
    %c0_3 = arith.constant 0 : index
    %c0_4 = arith.constant 0 : index
    %7 = vector.load %arg2[%c0_3, %c0_4] : memref<16x32xf32, #tpu.memory_space<vmem>>, vector<16x32xf32>
    %cst = arith.constant dense<0.000000e+00> : vector<8x16xf32>
    %8 = tpu.matmul %3, %7, %cst {dimension_numbers = #tpu.dot_dimension_numbers<[1], [1], [0], [0], [0, 0, 1, 0], [], []>} : vector<8x32xf32>, vector<16x32xf32>, vector<8x16xf32> -> vector<8x16xf32>
    %cst_5 = arith.constant 2.000000e+00 : f32
    %9 = vector.broadcast %cst_5 : f32 to vector<8x16xf32>
    %10 = arith.mulf %8, %9 : vector<8x16xf32>
    %cst_6 = arith.constant dense<0.000000e+00> : vector<8x16xf32>
    %11 = tpu.matmul %3, %6, %cst_6 {dimension_numbers = #tpu.dot_dimension_numbers<[1], [1], [0], [0], [0, 0, 1, 0], [], []>} : vector<8x32xf32>, vector<16x32xf32>, vector<8x16xf32> -> vector<8x16xf32>
    %cst_7 = arith.constant 2.000000e+00 : f32
    %12 = vector.broadcast %cst_7 : f32 to vector<8x16xf32>
    %13 = arith.mulf %11, %12 : vector<8x16xf32>
    %cst_8 = arith.constant dense<0.000000e+00> : vector<8x16xf32>
    %14 = tpu.matmul %5, %6, %cst_8 {dimension_numbers = #tpu.dot_dimension_numbers<[1], [1], [0], [0], [0, 0, 1, 0], [], []>} : vector<8x32xf32>, vector<16x32xf32>, vector<8x16xf32> -> vector<8x16xf32>
    %cst_9 = arith.constant 2.000000e+00 : f32
    %15 = vector.broadcast %cst_9 : f32 to vector<8x16xf32>
    %16 = arith.mulf %14, %15 : vector<8x16xf32>
    %cst_10 = arith.constant dense<0.000000e+00> : vector<8x16xf32>
    %17 = tpu.matmul %5, %7, %cst_10 {dimension_numbers = #tpu.dot_dimension_numbers<[1], [1], [0], [0], [0, 0, 1, 0], [], []>} : vector<8x32xf32>, vector<16x32xf32>, vector<8x16xf32> -> vector<8x16xf32>
    %cst_11 = arith.constant 2.000000e+00 : f32
    %18 = vector.broadcast %cst_11 : f32 to vector<8x16xf32>
    %19 = arith.mulf %17, %18 : vector<8x16xf32>
    %20 = tpu.iota {dimensions = array<i32: 1>} : vector<8x16xi32>
    %21 = tpu.iota {dimensions = array<i32: 0>} : vector<8x16xi32>
    %c8_i32_12 = arith.constant 8 : i32
    %22 = arith.muli %arg0, %c8_i32_12 : i32
    %23 = vector.broadcast %22 : i32 to vector<8x16xi32>
    %24 = arith.addi %21, %23 : vector<8x16xi32>
    %25 = arith.cmpi eq, %20, %24 : vector<8x16xi32>
    %cst_13 = arith.constant 0xFF800000 : f32
    %26 = vector.broadcast %cst_13 : f32 to vector<8x16xf32>
    %27 = arith.select %25, %26, %13 : vector<8x16xi1>, vector<8x16xf32>
    %cst_14 = arith.constant 0xFF800000 : f32
    %28 = vector.broadcast %cst_14 : f32 to vector<8x16xf32>
    %29 = arith.select %25, %28, %19 : vector<8x16xi1>, vector<8x16xf32>
    %30 = arith.mulf %3, %5 : vector<8x32xf32>
    %cst_15 = arith.constant dense<0.000000e+00> : vector<8xf32>
    %31 = vector.multi_reduction <add>, %30, %cst_15 [1] : vector<8x32xf32> to vector<8xf32>
    %32 = vector.shape_cast %31 : vector<8xf32> to vector<8x1xf32>
    %cst_16 = arith.constant 2.000000e+00 : f32
    %33 = vector.broadcast %cst_16 : f32 to vector<8x1xf32>
    %34 = arith.mulf %32, %33 : vector<8x1xf32>
    %cst_17 = arith.constant dense<0xFF800000> : vector<8xf32>
    %35 = vector.multi_reduction <maximumf>, %10, %cst_17 [1] : vector<8x16xf32> to vector<8xf32>
    %36 = vector.shape_cast %35 : vector<8xf32> to vector<8x1xf32>
    %cst_18 = arith.constant dense<0xFF800000> : vector<8xf32>
    %37 = vector.multi_reduction <maximumf>, %27, %cst_18 [1] : vector<8x16xf32> to vector<8xf32>
    %38 = vector.shape_cast %37 : vector<8xf32> to vector<8x1xf32>
    %39 = arith.maximumf %36, %38 : vector<8x1xf32>
    %40 = vector.broadcast %39 : vector<8x1xf32> to vector<8x16xf32>
    %41 = arith.subf %10, %40 : vector<8x16xf32>
    %42 = math.exp %41 : vector<8x16xf32>
    %cst_19 = arith.constant dense<0.000000e+00> : vector<8xf32>
    %43 = vector.multi_reduction <add>, %42, %cst_19 [1] : vector<8x16xf32> to vector<8xf32>
    %44 = vector.shape_cast %43 : vector<8xf32> to vector<8x1xf32>
    %45 = vector.broadcast %39 : vector<8x1xf32> to vector<8x16xf32>
    %46 = arith.subf %27, %45 : vector<8x16xf32>
    %47 = math.exp %46 : vector<8x16xf32>
    %cst_20 = arith.constant dense<0.000000e+00> : vector<8xf32>
    %48 = vector.multi_reduction <add>, %47, %cst_20 [1] : vector<8x16xf32> to vector<8xf32>
    %49 = vector.shape_cast %48 : vector<8xf32> to vector<8x1xf32>
    %50 = arith.addf %44, %49 : vector<8x1xf32>
    %51 = math.log %50 : vector<8x1xf32>
    %52 = arith.addf %51, %39 : vector<8x1xf32>
    %cst_21 = arith.constant dense<0xFF800000> : vector<8xf32>
    %53 = vector.multi_reduction <maximumf>, %29, %cst_21 [1] : vector<8x16xf32> to vector<8xf32>
    %54 = vector.shape_cast %53 : vector<8xf32> to vector<8x1xf32>
    %cst_22 = arith.constant dense<0xFF800000> : vector<8xf32>
    %55 = vector.multi_reduction <maximumf>, %16, %cst_22 [1] : vector<8x16xf32> to vector<8xf32>
    %56 = vector.shape_cast %55 : vector<8xf32> to vector<8x1xf32>
    %57 = arith.maximumf %54, %56 : vector<8x1xf32>
    %58 = vector.broadcast %57 : vector<8x1xf32> to vector<8x16xf32>
    %59 = arith.subf %29, %58 : vector<8x16xf32>
    %60 = math.exp %59 : vector<8x16xf32>
    %cst_23 = arith.constant dense<0.000000e+00> : vector<8xf32>
    %61 = vector.multi_reduction <add>, %60, %cst_23 [1] : vector<8x16xf32> to vector<8xf32>
    %62 = vector.shape_cast %61 : vector<8xf32> to vector<8x1xf32>
    %63 = vector.broadcast %57 : vector<8x1xf32> to vector<8x16xf32>
    %64 = arith.subf %16, %63 : vector<8x16xf32>
    %65 = math.exp %64 : vector<8x16xf32>
    %cst_24 = arith.constant dense<0.000000e+00> : vector<8xf32>
    %66 = vector.multi_reduction <add>, %65, %cst_24 [1] : vector<8x16xf32> to vector<8xf32>
    %67 = vector.shape_cast %66 : vector<8xf32> to vector<8x1xf32>
    %68 = arith.addf %62, %67 : vector<8x1xf32>
    %69 = math.log %68 : vector<8x1xf32>
    %70 = arith.addf %69, %57 : vector<8x1xf32>
    %71 = arith.subf %52, %34 : vector<8x1xf32>
    %72 = vector.shape_cast %71 : vector<8x1xf32> to vector<1x8x1xf32>
    %cst_25 = arith.constant dense<0.000000e+00> : vector<1xf32>
    %73 = vector.multi_reduction <add>, %72, %cst_25 [1, 2] : vector<1x8x1xf32> to vector<1xf32>
    %74 = vector.shape_cast %73 : vector<1xf32> to vector<1x1x1xf32>
    %75 = vector.extract %74[0, 0, 0] : f32 from vector<1x1x1xf32>
    %76 = arith.subf %70, %34 : vector<8x1xf32>
    %77 = vector.shape_cast %76 : vector<8x1xf32> to vector<1x8x1xf32>
    %cst_26 = arith.constant dense<0.000000e+00> : vector<1xf32>
    %78 = vector.multi_reduction <add>, %77, %cst_26 [1, 2] : vector<1x8x1xf32> to vector<1xf32>
    %79 = vector.shape_cast %78 : vector<1xf32> to vector<1x1x1xf32>
    %80 = vector.extract %79[0, 0, 0] : f32 from vector<1x1x1xf32>
    %81 = arith.addf %75, %80 : f32
    %82 = vector.broadcast %81 : f32 to vector<1x8x128xf32>
    %c0_27 = arith.constant 0 : index
    %c0_28 = arith.constant 0 : index
    %c0_29 = arith.constant 0 : index
    %83 = vector.load %arg3[%c0_27, %c0_28, %c0_29] : memref<1x8x128xf32, #tpu.memory_space<vmem>>, vector<1x8x128xf32>
    tpu.vector_store %arg3[%c0_27, %c0_28, %c0_29], %82 {strides = array<i32>} : memref<1x8x128xf32, #tpu.memory_space<vmem>>, vector<1x8x128xf32>,
    return
  }
  func.func @transform_0(%arg0: i32) -> (i32, i32) {
    %c0_i32 = arith.constant 0 : i32
    %c0_i32_0 = arith.constant 0 : i32
    %c0_i32_1 = arith.constant 0 : i32
    return %c0_i32, %c0_i32_0 : i32, i32
  }
  func.func @transform_1(%arg0: i32) -> (i32, i32) {
    %c0_i32 = arith.constant 0 : i32
    %c0_i32_0 = arith.constant 0 : i32
    %c0_i32_1 = arith.constant 0 : i32
    return %c0_i32, %c0_i32_0 : i32, i32
  }
  func.func @transform_2(%arg0: i32) -> (i32, i32, i32) {
    %c0_i32 = arith.constant 0 : i32
    %c0_i32_0 = arith.constant 0 : i32
    %c0_i32_1 = arith.constant 0 : i32
    return %arg0, %c0_i32, %c0_i32_0 : i32, i32, i32
  }
}

</mosaic_0001>

<bundles_post_ra>
// kernel: tpu_custom_call.1
= control target key start
LH: loop header
LB: loop body
LE: loop exit
PB: predicated region body
PF: predicated region fallthrough
CT: control target
= control target key end

     0   :  { %7 = vsyncpa [#allocation3], 0  ;;  %s835_s0 = inlined_call_operand.hbm [shape: f32[16,32], index: 0, kind: input, shape index: {}]   ;;  %s836_s1 = inlined_call_operand.hbm [shape: f32[16,32], index: 1, kind: input, shape index: {}]   ;;  %s837_s2 = inlined_call_operand.hbm [shape: f32[2,8,128], index: 2, kind: output, shape index: {}]  }
   0x1   :  { %8 = vsyncpa [#allocation6], 0 }
   0x2   :  { %9 = vsyncpa [#allocation4], 0 }
   0x3   :  { %11 = vsyncpa [#allocation4 + $0x1], 0  ;;  %s698_s9 = smov 0   ;;  %s700_s10 = smov 0  }
   0x4   :  { %s702_s11 = smov 0   ;;  %s704_s12 = smov 0  }
   0x5 LB: > { %s719_s13 = sadd.s32 4294967295, %s677_s12   ;;  %s444_s14 = sadd.s32 4294967294, %s677_s12   ;;  %s677_s12 = sphi %s704_s12, %s844_s12   ;;  %s673_s11 = sphi %s702_s11, %s843_s11   ;;  %s669_s10 = sphi %s700_s10, %s842_s10   ;;  %s665_s9 = sphi %s698_s9, %s841_s9  }
   0x6   : > { %s723_s15 = sadd.s32 1, %s677_s12   ;;  %s66_s16 = sadd.s32 1, %s673_s11 }
   0x7   : > { %s63_s17 = ssub.s32 %s677_s12, %s723_s15  ;;  %p76_p0 = scmp.ne.s32.totalorder %s673_s11, %s669_s10 }
   0x8   : > { %p64_p1 = scmp.eq.s32.totalorder %s63_s17, 0  ;;  %p77_p2 = scmp.eq.s32.totalorder %s719_s13, 1 }
   0x9   : > { %p82_p3 = scmp.ne.s32.totalorder %s669_s10, %s665_s9  ;;  %p83_p4 = scmp.eq.s32.totalorder %s444_s14, 1 }
   0xa   : > { %s734_s18 = scalar_select %p64_p1, %s673_s11, %s66_s16  }
   0xb   : > { %p736_p5 = por %p77_p2, %p76_p0  ;;  %p740_p6 = por %p83_p4, %p82_p3 }
   0xc   : > { %p445_p7 = scmp.ge.s32.totalorder %s677_s12, 1  ;;  %p90_p8 = scmp.lt.s32.totalorder %s677_s12, 3 }
   0xd   : > { %p494_p9 = scmp.eq.s32.totalorder %s719_s13, 0  ;;  %s101_s24 = sshll.u32 %s835_s0, 4  ;;  %s102_s24 = int_to_ptr.hbm [resolvable:$true] %s101_s24 }
   0xe   : > { %p747_p10 = pnand %p445_p7, %p90_p8  ;;  %s679_s25 = smov [#allocation2]  }
   0xf   : > { %s103_s26 = sshll.u32 %s679_s25, 4  ;;  %s115_s29 = sshll.u32 %s836_s1, 4  ;;  %s104_s26 = int_to_ptr.vmem [resolvable:$true] %s103_s26  ;;  %s116_s29 = int_to_ptr.hbm [resolvable:$true] %s115_s29 }
  0x10   : > { %p483_p11 = pneg %p747_p10  ;;  %s680_s30 = smov 128  }
  0x11   : > { %s681_s3 = smov 8   ;;  %s682_s4 = smov [#allocation5]  }
  0x12   : > { %p484_p12 = pnand %p494_p9, %p483_p11  ;;  %s117_s5 = sshll.u32 %s682_s4, 4  ;;  %s118_s5 = int_to_ptr.vmem [resolvable:$true] %s117_s5 }
  0x13   : > { %133 = sbr.rel (%p747_p10) target bundleno = 628 (0x274), region = 28 }
  0x14   : > { %486 = dma.hbm_to_vmem [thread:$0]  (!%p484_p12), %s102_s24, 256, %s104_s26, [#allocation3], %s680_s30, %s680_s30, %s681_s3  }
  0x15   : > { %489 = dma.hbm_to_vmem [thread:$0]  (!%p484_p12), %s116_s29, 256, %s118_s5, [#allocation6], %s680_s30, %s680_s30, %s681_s3  }
  0x18   : > { %652 = dma.done.wait (%p494_p9), [#allocation3], 256  }
  0x19   : > { %654 = vsyncadd (%p494_p9), [#allocation3], 4294967040 }
  0x1a   : > { %656 = dma.done.wait (%p494_p9), [#allocation6], 256  }
  0x1b   : > { %658 = vsyncadd (%p494_p9), [#allocation6], 4294967040  ;;  %vm165_vm0 = vcmask 261120   ;;  %s772_s6 = sshll.u32 %s719_s13, 3  ;;  %v164_v0 = vld [vmem:[#allocation5 + $0x8] sm:$0xff]  ;;  %v162_v1 = vld [vmem:[#allocation2 + $0x8] sm:$0xff]  ;;  %v268_v6 = vlaneseq }
  0x1c   : > { %453 = vmatpush.xpose.msk.msra.mxu0 %vm165_vm0, %v164_v0  ;;  %462 = vmatpush.xpose.msk.msra.mxu3 %vm165_vm0, %v164_v0  ;;  %v163_v2 = vld [vmem:[#allocation5] sm:$0xff]  ;;  %v161_v3 = vld [vmem:[#allocation2] sm:$0xff]  ;;  %s157_s7 = scalar_lea.vmem [#allocation2], %s772_s6  ;;  %s159_s8 = scalar_lea.vmem [#allocation5], %s772_s6  ;;  %v272_v8 = vstv %s772_s6  ;;  %vm282_vm1 = vcmask 130048   ;;  %vm330_vm3 = vcmask 7168  }
  0x1d   : > { %456 = vmatpush.xpose.msk.msra.mxu1 %vm165_vm0, %v162_v1  ;;  %459 = vmatpush.xpose.msk.msra.mxu2 %vm165_vm0, %v162_v1  ;;  %v781_v4 = vld [vmem:[%s157_s7] sm:$0xff]  ;;  %v271_v7 = vshrl.u32 %v268_v6, 7  ;;  %v269_v9 = vand.u32 127, %v268_v6  ;;  %s153_s13 = sand.u32 1, %s669_s10   ;;  %s366_s21 = scalar_lea.hbm %s837_s2, %s772_s6 }
  0x1e   : > { %v160_v5 = vld [vmem:[%s159_s8] sm:$0xff]  ;;  %s451_s14 = sshll.u32 %s153_s13, 3  ;;  %s370_s25 = sshll.u32 %s366_s21, 4  ;;  %s371_s25 = int_to_ptr.hbm [resolvable:$true] %s370_s25 }
  0x1f   : > { %v273_v10 = vadd.s32 %v272_v8, %v271_v7  ;;  %v277_v47 = vmul.f32 %v160_v5, %v781_v4  ;;  %s155_s22 = scalar_lea.vmem [#allocation7], %s451_s14  ;;  %s356_s28 = scalar_lea.sflag [#allocation4], %s153_s13 }
  0x20   : > { %454 = vmatpush.xpose.msk.msra.mxu0 %vm165_vm0, %v163_v2  ;;  %463 = vmatpush.xpose.msk.msra.mxu3 %vm165_vm0, %v163_v2  ;;  %s368_s23 = sshll.u32 %s155_s22, 4  ;;  %s621_s29 = sshra.s32 %s371_s25, 4  ;;  %s369_s23 = int_to_ptr.vmem [resolvable:$true] %s368_s23  ;;  %s622_s29 = int_to_ptr.hbm [resolvable:$true] %s621_s29 }
  0x21   : > { %457 = vmatpush.xpose.msk.msra.mxu1 %vm165_vm0, %v161_v3  ;;  %460 = vmatpush.xpose.msk.msra.mxu2 %vm165_vm0, %v161_v3  ;;  %vm274_vm2 = vcmp.eq.s32.totalorder %v269_v9, %v273_v10  ;;  %v278_v48 = vsel %vm165_vm0, %v277_v47, 0.0  ;;  %s623_s30 = scalar_lea.hbm %s622_s29, 8  ;;  %s627_s5 = scalar_lea.hbm %s837_s2, 16 }
  0x22   : > { %p624_p13 = scmp.ne.s32.totalorder %s622_s29, %s623_s30  ;;  %p628_p2 = scmp.lt.s32.totalorder %s622_s29, %s837_s2 }
  0x23   : > { %455 = vmatmul.msk.f32.vlgmr.msra.gmra.mxu0 %vm165_vm0, %v781_v4  ;;  %464 = vmatmul.msk.f32.vlgmr.msra.gmra.mxu3 %vm165_vm0, %v160_v5  ;;  %p629_p3 = scmp.lt.s32.totalorder %s627_s5, %s623_s30 }
  0x24   : > { %458 = vmatmul.msk.f32.vlgmr.msra.gmra.mxu1 %vm165_vm0, %v781_v4  ;;  %461 = vmatmul.msk.f32.vlgmr.msra.gmra.mxu2 %vm165_vm0, %v160_v5  ;;  %p625_p0 = pnand %p624_p13, %p736_p5 }
  0x25   : > { %p630_p4 = por %p629_p3, %p628_p2 }
  0x26   : > { %p626_p1 = pneg %p625_p0 }
  0x28   : > { %p631_p7 = pnand %p630_p4, %p626_p1 }
  0xa0   : > { %v192_v11 = vpop.f32.mrf.mxu0 }
  0xa1   : > { %v195_v12 = vmul.f32 2.0, %v192_v11  ;;  %v219_v13 = vpop.f32.mrf.mxu1 }
  0xa2   : > { %v222_v14 = vmul.f32 2.0, %v219_v13 }
  0xa3   : > { %v283_v15 = vsel %vm282_vm1, %v195_v12, -inf }
  0xa4   : > { %284 = vmax.xlane.f32.xlu0 %v283_v15  ;;  %v275_v17 = vsel %vm274_vm2, -inf, %v222_v14 }
  0xa5   : > { %v286_v20 = vsel %vm282_vm1, %v275_v17, -inf }
  0xa6   : > { %v264_v16 = vpop.f32.mrf.mxu3 }
  0xa7   : > { %v267_v18 = vmul.f32 2.0, %v264_v16  ;;  %v243_v21 = vpop.f32.mrf.mxu2 }
  0xa8   : > { %v246_v23 = vmul.f32 2.0, %v243_v21 }
  0xa9   : > { %v276_v19 = vsel %vm274_vm2, -inf, %v267_v18 }
  0xaa   : > { %v306_v22 = vsel %vm282_vm1, %v276_v19, -inf  ;;  %v309_v24 = vsel %vm282_vm1, %v246_v23, -inf }
  0xab   : > { %307 = vmax.xlane.f32.xlu1 %v306_v22 }
  0xac   : > { %287 = vmax.xlane.f32.xlu0 %v286_v20 }
  0xb3   : > { %310 = vmax.xlane.f32.xlu1 %v309_v24 }
 0x117   : > { %v285_v25 = vpop.xlane.xlu0 %284 }
 0x11e   : > { %v308_v26 = vpop.xlane.xlu1 %307 }
 0x11f   : > { %v288_v27 = vpop.xlane.xlu0 %287 }
 0x120   : > { %v289_v28 = vmax.f32 %v285_v25, %v288_v27 }
 0x122   : > { %v290_v29 = vsub.f32 %v195_v12, %v289_v28  ;;  %v296_v31 = vsub.f32 %v275_v17, %v289_v28 }
 0x124   : > { %v291_v30 = vmul.f32 1.442695, %v290_v29  ;;  %v297_v34 = vmul.f32 1.442695, %v296_v31 }
 0x126   : > { %535 = vpow2.f32 %v291_v30  ;;  %v311_v32 = vpop.xlane.xlu1 %310 }
 0x127   : > { %v312_v33 = vmax.f32 %v308_v26, %v311_v32  ;;  %537 = vpow2.f32 %v297_v34 }
 0x129   : > { %v313_v35 = vsub.f32 %v276_v19, %v312_v33  ;;  %v319_v36 = vsub.f32 %v246_v23, %v312_v33 }
 0x12b   : > { %v314_v37 = vmul.f32 1.442695, %v313_v35  ;;  %v320_v38 = vmul.f32 1.442695, %v319_v36 }
 0x12c   : > { %v536_v39 = vpop.eup %535 }
 0x12d   : > { %539 = vpow2.f32 %v314_v37  ;;  %v293_v40 = vsel %vm282_vm1, %v536_v39, 0.0  ;;  %v538_v41 = vpop.eup %537 }
 0x12e   : > { %541 = vpow2.f32 %v320_v38  ;;  %294 = vadd.xlane.f32.xlu2 %v293_v40  ;;  %v299_v46 = vsel %vm282_vm1, %v538_v41, 0.0 }
 0x133   : > { %v540_v42 = vpop.eup %539 }
 0x134   : > { %v542_v43 = vpop.eup %541  ;;  %v316_v44 = vsel %vm282_vm1, %v540_v42, 0.0 }
 0x135   : > { %v322_v45 = vsel %vm282_vm1, %v542_v43, 0.0  ;;  %317 = vadd.xlane.f32.xlu0 %v316_v44 }
 0x136   : > { %323 = vadd.xlane.f32.xlu1 %v322_v45  ;;  %300 = vadd.xlane.f32.xlu2 %v299_v46 }
 0x13e   : > { %279 = vadd.xlane.f32.xlu2 %v278_v48 }
 0x1a1   : > { %v295_v49 = vpop.xlane.xlu2 %294 }
 0x1a8   : > { %v318_v50 = vpop.xlane.xlu0 %317 }
 0x1a9   : > { %v324_v51 = vpop.xlane.xlu1 %323  ;;  %v301_v52 = vpop.xlane.xlu2 %300 }
 0x1aa   : > { %v325_v53 = vadd.f32 %v324_v51, %v318_v50  ;;  %v302_v54 = vadd.f32 %v301_v52, %v295_v49 }
 0x1ac   : > { %543 = vlog2.f32 %v325_v53 }
 0x1ad   : > { %545 = vlog2.f32 %v302_v54 }
 0x1b1   : > { %v280_v55 = vpop.xlane.xlu2 %279 }
 0x1b2   : > { %v544_v56 = vpop.eup %543  ;;  %v281_v59 = vmul.f32 2.0, %v280_v55 }
 0x1b3   : > { %v546_v57 = vpop.eup %545  ;;  %v327_v58 = vmul.f32 0.6931472, %v544_v56 }
 0x1b4   : > { %v304_v60 = vmul.f32 0.6931472, %v546_v57 }
 0x1b5   : > { %v328_v61 = vadd.f32 %v327_v58, %v312_v33 }
 0x1b6   : > { %v305_v62 = vadd.f32 %v304_v60, %v289_v28 }
 0x1b7   : > { %v341_v63 = vsub.f32 %v328_v61, %v281_v59 }
 0x1b8   : > { %v329_v0 = vsub.f32 %v305_v62, %v281_v59 }
 0x1b9   : > { %v342_v1 = vsel %vm330_vm3, %v341_v63, 0.0 }
 0x1ba   : > { %343 = vadd.xlane.f32.xlu1 %v342_v1  ;;  %v331_v2 = vsel %vm330_vm3, %v329_v0, 0.0 }
 0x1bb   : > { %332 = vadd.xlane.f32.xlu0 %v331_v2 }
 0x22d   : > { %v344_v3 = vpop.xlane.xlu1 %343 }
 0x22e   : > { %v345_v4 = vrot.slane %v344_v3, 4  ;;  %v333_v5 = vpop.xlane.xlu0 %332 }
 0x22f   : > { %v334_v6 = vrot.slane %v333_v5, 4 }
 0x230   : > { %v346_v7 = vadd.f32 %v345_v4, %v344_v3 }
 0x231   : > { %v335_v8 = vadd.f32 %v334_v6, %v333_v5 }
 0x232   : > { %v347_v9 = vrot.slane %v346_v7, 2 }
 0x233   : > { %v336_v10 = vrot.slane %v335_v8, 2 }
 0x234   : > { %v348_v11 = vadd.f32 %v347_v9, %v346_v7 }
 0x235   : > { %v337_v12 = vadd.f32 %v336_v10, %v335_v8 }
 0x236   : > { %v349_v13 = vrot.slane %v348_v11, 1 }
 0x237   : > { %v338_v14 = vrot.slane %v337_v12, 1 }
 0x238   : > { %v350_v15 = vadd.f32 %v349_v13, %v348_v11 }
 0x239   : > { %v339_v16 = vadd.f32 %v338_v14, %v337_v12 }
 0x23b   : > { %469 = vpush %v339_v16 }
 0x23c   : > { %471 = vpush %v350_v15 }
 0x26c   : > { %s470_s24 = spop %469 }
 0x26d   : > { %s472_s26 = spop %471 }
 0x26e   : > { %s352_s27 = sadd.f32 %s472_s26, %s470_s24 }
 0x270   : > { %v353_v17 = vstv %s352_s27 }
 0x271   : > { %354 = vst [vmem:[%s155_s22] sm:$0xff] %v353_v17 }
 0x272   : > { %634 = shalt.err (!%p631_p7)
}
 0x273   : > { %481 = dma.vmem_to_hbm [thread:$0]  (%p736_p5), %s369_s23, 128, %s371_s25, %s356_s28  }
 0x274 PF: > { %p498_p8 = scmp.ge.s32.totalorder %s677_s12, 2  ;;  %s382_s8 = sand.u32 1, %s665_s9  }
 0x275   : > { %s383_s13 = scalar_lea.sflag [#allocation4], %s382_s8 }
 0x276   : > { %p491_p9 = pnand %p498_p8, %p740_p6 }
 0x278   : > { %p492_p10 = pneg %p491_p9 }
 0x27a   : > { %660 = dma.done.wait (%p492_p10), %s383_s13, 128  }
 0x27b   : > { %662 = vsyncadd (%p492_p10), %s383_s13, 4294967168  ;;  %p14_p11 = scmp.ge.s32.totalorder %s723_s15, 4   ;;  %s841_s9 = smov %s669_s10 }
 0x27c   : > { %s842_s10 = smov %s673_s11  ;;  %s843_s11 = smov %s734_s18 }
 0x27d   : > { %s844_s12 = smov %s723_s15  ;;  %16 = sbr.rel (!%p14_p11) target bundleno = 5 (0x5), region = 71 }
 0x282   :  { %389 = vsyncpa [#allocation3], 1 }
 0x283   :  { %391 = vsyncpa [#allocation3 + $0x1], 1 }
 0x284   :  { %392 = vsyncpa [#allocation6], 1 }
 0x285   :  { %393 = vsyncpa [#allocation4], 1 }
 0x286   :  { %395 = vsyncpa [#allocation4 + $0x1], 1 }

</bundles_post_ra>
